<compile_context>
chip_gen: v5e
topology: v5e:2x2
jax: 0.10.0
libtpu: 0.0.40
codegen_flags: <defaults>
</compile_context>

<pallas_src>
import functools
import math

import jax
import jax.numpy as jnp
from jax.experimental import pallas as pl
from jax.experimental.pallas import tpu as pltpu


# ------------------------------ Pallas kernel -------------------------------

def _channel_attention_kernel(x_ref, w1_ref, w2_ref, o_ref,
                              sum_acc, max_acc, *, inv_hw):
    """Grid: (batch, spatial_chunk). x_ref block: (1, C, block_s)."""
    s = pl.program_id(1)

    @pl.when(s == 0)
    def _init():
        sum_acc[...] = jnp.zeros(sum_acc.shape, sum_acc.dtype)
        max_acc[...] = jnp.full(max_acc.shape, -jnp.inf, dtype=max_acc.dtype)

    blk = x_ref[0].astype(jnp.float32)                               # (C, block_s)
    sum_acc[...] += jnp.sum(blk, axis=1, keepdims=True)              # (C, 1)
    max_acc[...] = jnp.maximum(max_acc[...],
                               jnp.max(blk, axis=1, keepdims=True))  # (C, 1)

    @pl.when(s == pl.num_programs(1) - 1)
    def _finalize():
        avg = sum_acc[...] * inv_hw                                  # (C, 1)
        pooled = jnp.concatenate([avg, max_acc[...]], axis=1)        # (C, 2)
        w1 = w1_ref[...].astype(jnp.float32)                         # (Ch, C)
        w2 = w2_ref[...].astype(jnp.float32)                         # (C, Ch)
        # shared MLP applied to both pooled vectors at once (columns = {avg, max})
        h = jnp.dot(w1, pooled, preferred_element_type=jnp.float32)  # (Ch, 2)
        h = jnp.maximum(h, 0.0)
        o = jnp.dot(w2, h, preferred_element_type=jnp.float32)       # (C, 2)
        z = o[:, 0:1] + o[:, 1:2]                                    # (C, 1)
        att = 1.0 / (1.0 + jnp.exp(-z))                              # sigmoid
        o_ref[0] = att.astype(o_ref.dtype)


# ------------------------------- wrapper ------------------------------------

def channel_attention(x, w1, w2, *, block_s=None):
    """Channel attention forward.

    x  : (N, C, H, W)  NCHW activations (float32 or bfloat16)
    w1 : (C//ratio, C) — squeezed weight of Conv2d(C, C//ratio, 1, bias=False)
    w2 : (C, C//ratio) — squeezed weight of Conv2d(C//ratio, C, 1, bias=False)
    returns (N, C, 1, 1) float32 attention map = sigmoid(MLP(avg) + MLP(max)).
    """
    N, C, H, W = x.shape
    HW = H * W
    Ch = w1.shape[0]
    assert w1.shape == (Ch, C) and w2.shape == (C, Ch)

    xf = x.reshape(N, C, HW)  # contiguous reshape, no HBM shuffle

    # Spatial chunk: biggest multiple of 128 that divides HW (pipelined reduction),
    # else fall back to the full extent (block == full dim is always legal).
    if block_s is None:
        block_s = HW
        if HW % 128 == 0:
            for cand in (2048, 1024, 512, 256, 128):
                if HW % cand == 0:
                    block_s = cand
                    break
    assert HW % block_s == 0, (HW, block_s)
    n_s = HW // block_s

    kernel = functools.partial(_channel_attention_kernel, inv_hw=1.0 / HW)

    itemsize = jnp.dtype(x.dtype).itemsize
    out = pl.pallas_call(
        kernel,
        out_shape=jax.ShapeDtypeStruct((N, C, 1), jnp.float32),
        grid=(N, n_s),
        in_specs=[
            pl.BlockSpec((1, C, block_s), lambda b, s: (b, 0, s)),
            pl.BlockSpec((Ch, C), lambda b, s: (0, 0)),   # resident across grid
            pl.BlockSpec((C, Ch), lambda b, s: (0, 0)),   # resident across grid
        ],
        out_specs=pl.BlockSpec((1, C, 1), lambda b, s: (b, 0, 0)),
        scratch_shapes=[
            pltpu.VMEM((C, 1), jnp.float32),   # running sum
            pltpu.VMEM((C, 1), jnp.float32),   # running max
        ],
        compiler_params=pltpu.CompilerParams(
            dimension_semantics=("parallel", "arbitrary"),
        ),
        cost_estimate=pl.CostEstimate(
            flops=2 * N * C * HW + 8 * N * C * Ch,
            transcendentals=N * C,
            bytes_accessed=N * C * HW * itemsize + (w1.size + w2.size) * 4 + N * C * 4,
        ),
    )(xf, w1, w2)

    return out.reshape(N, C, 1, 1)


# ---------------------------------- main -------------------------------------

if __name__ == "__main__":
    key = jax.random.PRNGKey(0)
    kx, k1, k2 = jax.random.split(key, 3)

    # Small shapes consistent with the module: channel must be divisible by ratio=16.
    N, C, H, W = 2, 128, 16, 16
    ratio = 16
    Ch = C // ratio  # 8

    x = jax.random.normal(kx, (N, C, H, W), jnp.float32)
    w1 = (1.0 / math.sqrt(C)) * jax.random.normal(k1, (Ch, C), jnp.float32)
    w2 = (1.0 / math.sqrt(Ch)) * jax.random.normal(k2, (C, Ch), jnp.float32)

    # block_s=128 -> 2 spatial chunks, exercising the accumulate/finalize pipeline.
    fwd = jax.jit(functools.partial(channel_attention, block_s=128))
    out = fwd(x, w1, w2)
    jax.block_until_ready(out)

    # Pure-JAX reference (matches the PyTorch forward).
    xf = x.reshape(N, C, H * W)
    avg = xf.mean(axis=-1)                       # (N, C)
    mx = xf.max(axis=-1)                         # (N, C)

    def mlp(v):
        return jnp.maximum(v @ w1.T, 0.0) @ w2.T

    ref = jax.nn.sigmoid(mlp(avg) + mlp(mx)).reshape(N, C, 1, 1)

    assert out.shape == (N, C, 1, 1), out.shape
    assert bool(jnp.all(jnp.isfinite(out)))
    err = float(jnp.max(jnp.abs(out - ref)))
    assert jnp.allclose(out, ref, atol=1e-5, rtol=1e-5), f"max abs err = {err}"
    print("KERNEL_OK")
</pallas_src>

<mosaic_0001>
module attributes {stable_mosaic.version = 11 : i64} {
  func.func @_channel_attention_kernel(%arg0: i32, %arg1: i32, %arg2: memref<1x128x128xf32, #tpu.memory_space<vmem>>, %arg3: memref<8x128xf32, #tpu.memory_space<vmem>>, %arg4: memref<128x8xf32, #tpu.memory_space<vmem>>, %arg5: memref<1x128x1xf32, #tpu.memory_space<vmem>>, %arg6: memref<128x1xf32, #tpu.memory_space<vmem>>, %arg7: memref<128x1xf32, #tpu.memory_space<vmem>>) attributes {dimension_semantics = [#tpu.dimension_semantics<parallel>, #tpu.dimension_semantics<arbitrary>], iteration_bounds = array<i64: 2, 2>, scalar_prefetch = 0 : i64, scratch_operands = 2 : i64, tpu.core_type = #tpu.core_type<tc>, window_params = [{transform_indices = @transform_0, window_bounds = array<i64: 1, 128, 128>}, {pipeline_mode = #tpu.pipeline_mode<synchronous>, transform_indices = @transform_1, window_bounds = array<i64: 8, 128>}, {pipeline_mode = #tpu.pipeline_mode<synchronous>, transform_indices = @transform_2, window_bounds = array<i64: 128, 8>}, {transform_indices = @transform_3, window_bounds = array<i64: 1, 128, 1>}]} {
    %c0_i32 = arith.constant 0 : i32
    %0 = arith.cmpi eq, %arg1, %c0_i32 : i32
    %1 = arith.extui %0 : i1 to i32
    %c0_i32_0 = arith.constant 0 : i32
    %2 = arith.cmpi ne, %1, %c0_i32_0 : i32
    scf.if %2 {
      %cst_13 = arith.constant 0.000000e+00 : f32
      %18 = vector.broadcast %cst_13 : f32 to vector<128x1xf32>
      %c0_14 = arith.constant 0 : index
      %c0_15 = arith.constant 0 : index
      %19 = vector.load %arg6[%c0_14, %c0_15] : memref<128x1xf32, #tpu.memory_space<vmem>>, vector<128x1xf32>
      tpu.vector_store %arg6[%c0_14, %c0_15], %18 {strides = array<i32>} : memref<128x1xf32, #tpu.memory_space<vmem>>, vector<128x1xf32>,
      %cst_16 = arith.constant 0xFF800000 : f32
      %20 = vector.broadcast %cst_16 : f32 to vector<128x1xf32>
      %c0_17 = arith.constant 0 : index
      %c0_18 = arith.constant 0 : index
      %21 = vector.load %arg7[%c0_17, %c0_18] : memref<128x1xf32, #tpu.memory_space<vmem>>, vector<128x1xf32>
      tpu.vector_store %arg7[%c0_17, %c0_18], %20 {strides = array<i32>} : memref<128x1xf32, #tpu.memory_space<vmem>>, vector<128x1xf32>,
    } else {
    }
    %c0 = arith.constant 0 : index
    %c0_1 = arith.constant 0 : index
    %c0_2 = arith.constant 0 : index
    %3 = vector.load %arg2[%c0, %c0_1, %c0_2] : memref<1x128x128xf32, #tpu.memory_space<vmem>>, vector<1x128x128xf32>
    %4 = vector.shape_cast %3 : vector<1x128x128xf32> to vector<128x128xf32>
    %c0_3 = arith.constant 0 : index
    %c0_4 = arith.constant 0 : index
    %5 = vector.load %arg6[%c0_3, %c0_4] : memref<128x1xf32, #tpu.memory_space<vmem>>, vector<128x1xf32>
    %cst = arith.constant dense<0.000000e+00> : vector<128xf32>
    %6 = vector.multi_reduction <add>, %4, %cst [1] : vector<128x128xf32> to vector<128xf32>
    %7 = vector.shape_cast %6 : vector<128xf32> to vector<128x1xf32>
    %8 = arith.addf %5, %7 : vector<128x1xf32>
    %c0_5 = arith.constant 0 : index
    %c0_6 = arith.constant 0 : index
    %9 = vector.load %arg6[%c0_5, %c0_6] : memref<128x1xf32, #tpu.memory_space<vmem>>, vector<128x1xf32>
    tpu.vector_store %arg6[%c0_5, %c0_6], %8 {strides = array<i32>} : memref<128x1xf32, #tpu.memory_space<vmem>>, vector<128x1xf32>,
    %c0_7 = arith.constant 0 : index
    %c0_8 = arith.constant 0 : index
    %10 = vector.load %arg7[%c0_7, %c0_8] : memref<128x1xf32, #tpu.memory_space<vmem>>, vector<128x1xf32>
    %cst_9 = arith.constant dense<0xFF800000> : vector<128xf32>
    %11 = vector.multi_reduction <maximumf>, %4, %cst_9 [1] : vector<128x128xf32> to vector<128xf32>
    %12 = vector.shape_cast %11 : vector<128xf32> to vector<128x1xf32>
    %13 = arith.maximumf %10, %12 : vector<128x1xf32>
    %c0_10 = arith.constant 0 : index
    %c0_11 = arith.constant 0 : index
    %14 = vector.load %arg7[%c0_10, %c0_11] : memref<128x1xf32, #tpu.memory_space<vmem>>, vector<128x1xf32>
    tpu.vector_store %arg7[%c0_10, %c0_11], %13 {strides = array<i32>} : memref<128x1xf32, #tpu.memory_space<vmem>>, vector<128x1xf32>,
    %c1_i32 = arith.constant 1 : i32
    %15 = arith.cmpi eq, %arg1, %c1_i32 : i32
    %16 = arith.extui %15 : i1 to i32
    %c0_i32_12 = arith.constant 0 : i32
    %17 = arith.cmpi ne, %16, %c0_i32_12 : i32
    scf.if %17 {
      %c0_13 = arith.constant 0 : index
      %c0_14 = arith.constant 0 : index
      %18 = vector.load %arg6[%c0_13, %c0_14] : memref<128x1xf32, #tpu.memory_space<vmem>>, vector<128x1xf32>
      %cst_15 = arith.constant 3.906250e-03 : f32
      %19 = vector.broadcast %cst_15 : f32 to vector<128x1xf32>
      %20 = arith.mulf %18, %19 : vector<128x1xf32>
      %c0_16 = arith.constant 0 : index
      %c0_17 = arith.constant 0 : index
      %21 = vector.load %arg7[%c0_16, %c0_17] : memref<128x1xf32, #tpu.memory_space<vmem>>, vector<128x1xf32>
      %22 = tpu.concatenate %20, %21 in 1 : vector<128x1xf32>, vector<128x1xf32> -> vector<128x2xf32>
      %c0_18 = arith.constant 0 : index
      %c0_19 = arith.constant 0 : index
      %23 = vector.load %arg3[%c0_18, %c0_19] : memref<8x128xf32, #tpu.memory_space<vmem>>, vector<8x128xf32>
      %c0_20 = arith.constant 0 : index
      %c0_21 = arith.constant 0 : index
      %24 = vector.load %arg4[%c0_20, %c0_21] : memref<128x8xf32, #tpu.memory_space<vmem>>, vector<128x8xf32>
      %cst_22 = arith.constant dense<0.000000e+00> : vector<8x2xf32>
      %25 = tpu.matmul %23, %22, %cst_22 {dimension_numbers = #tpu.dot_dimension_numbers<[1], [0], [0], [1], [0, 0, 1, 1], [], []>} : vector<8x128xf32>, vector<128x2xf32>, vector<8x2xf32> -> vector<8x2xf32>
      %cst_23 = arith.constant 0.000000e+00 : f32
      %26 = vector.broadcast %cst_23 : f32 to vector<8x2xf32>
      %27 = arith.maximumf %25, %26 : vector<8x2xf32>
      %cst_24 = arith.constant dense<0.000000e+00> : vector<128x2xf32>
      %28 = tpu.matmul %24, %27, %cst_24 {dimension_numbers = #tpu.dot_dimension_numbers<[1], [0], [0], [1], [0, 0, 1, 1], [], []>} : vector<128x8xf32>, vector<8x2xf32>, vector<128x2xf32> -> vector<128x2xf32>
      %29 = vector.extract_strided_slice %28 {offsets = [0, 0], sizes = [128, 1], strides = [1, 1]} : vector<128x2xf32> to vector<128x1xf32>
      %30 = vector.extract_strided_slice %28 {offsets = [0, 1], sizes = [128, 1], strides = [1, 1]} : vector<128x2xf32> to vector<128x1xf32>
      %31 = arith.addf %29, %30 : vector<128x1xf32>
      %cst_25 = arith.constant 0.000000e+00 : f32
      %32 = vector.broadcast %cst_25 : f32 to vector<128x1xf32>
      %33 = arith.subf %32, %31 : vector<128x1xf32>
      %34 = math.exp %33 : vector<128x1xf32>
      %cst_26 = arith.constant 1.000000e+00 : f32
      %35 = vector.broadcast %cst_26 : f32 to vector<128x1xf32>
      %36 = arith.addf %35, %34 : vector<128x1xf32>
      %cst_27 = arith.constant 1.000000e+00 : f32
      %37 = vector.broadcast %cst_27 : f32 to vector<128x1xf32>
      %38 = arith.divf %37, %36 : vector<128x1xf32>
      %c0_28 = arith.constant 0 : index
      %c0_29 = arith.constant 0 : index
      %c0_30 = arith.constant 0 : index
      %39 = vector.load %arg5[%c0_28, %c0_29, %c0_30] : memref<1x128x1xf32, #tpu.memory_space<vmem>>, vector<1x128x1xf32>
      %40 = vector.shape_cast %39 : vector<1x128x1xf32> to vector<128x1xf32>
      %41 = vector.shape_cast %38 : vector<128x1xf32> to vector<1x128x1xf32>
      tpu.vector_store %arg5[%c0_28, %c0_29, %c0_30], %41 {strides = array<i32>} : memref<1x128x1xf32, #tpu.memory_space<vmem>>, vector<1x128x1xf32>,
    } else {
    }
    return
  }
  func.func @transform_0(%arg0: i32, %arg1: i32) -> (i32, i32, i32) {
    %c0_i32 = arith.constant 0 : i32
    %c0_i32_0 = arith.constant 0 : i32
    return %arg0, %c0_i32, %arg1 : i32, i32, i32
  }
  func.func @transform_1(%arg0: i32, %arg1: i32) -> (i32, i32) {
    %c0_i32 = arith.constant 0 : i32
    %c0_i32_0 = arith.constant 0 : i32
    %c0_i32_1 = arith.constant 0 : i32
    return %c0_i32, %c0_i32_0 : i32, i32
  }
  func.func @transform_2(%arg0: i32, %arg1: i32) -> (i32, i32) {
    %c0_i32 = arith.constant 0 : i32
    %c0_i32_0 = arith.constant 0 : i32
    %c0_i32_1 = arith.constant 0 : i32
    return %c0_i32, %c0_i32_0 : i32, i32
  }
  func.func @transform_3(%arg0: i32, %arg1: i32) -> (i32, i32, i32) {
    %c0_i32 = arith.constant 0 : i32
    %c0_i32_0 = arith.constant 0 : i32
    %c0_i32_1 = arith.constant 0 : i32
    return %arg0, %c0_i32, %c0_i32_0 : i32, i32, i32
  }
}

</mosaic_0001>

<bundles_post_ra>
// kernel: channel_attention.1
= control target key start
LH: loop header
LB: loop body
LE: loop exit
PB: predicated region body
PF: predicated region fallthrough
CT: control target
= control target key end

     0   :  { %s1532_s12 = smov 0   ;;  %s1534_s13 = smov 0   ;;  %s2011_s0 = inlined_call_operand.vmem [shape: f32[2,128,256], index: 0, kind: input, shape index: {}]   ;;  %s2012_s1 = inlined_call_operand.vmem [shape: f32[8,128], index: 1, kind: input, shape index: {}]   ;;  %s2013_s2 = inlined_call_operand.vmem [shape: f32[128,8], index: 2, kind: input, shape index: {}]   ;;  %s2014_s3 = inlined_call_operand.vmem [shape: f32[2,128,1], index: 3, kind: output, shape index: {}]  }
   0x1   :  { %s1536_s14 = smov 0   ;;  %s1538_s15 = smov 0  }
   0x2   :  { %s1540_s16 = smov 0   ;;  %s1542_s17 = smov 0  }
   0x3   :  { %s1544_s18 = smov 0  }
   0x4 LB: > { %s22_s19 = sadd.s32 1, %s1498_s16  ;;  %s25_s20 = sadd.s32 1, %s1502_s17  ;;  %s1506_s18 = sphi %s1544_s18, %s13_s18   ;;  %s1502_s17 = sphi %s1542_s17, %s2028_s17   ;;  %s1498_s16 = sphi %s1540_s16, %s2027_s16   ;;  %s1494_s15 = sphi %s1538_s15, %s2026_s15   ;;  %s1490_s14 = sphi %s1536_s14, %s2025_s14   ;;  %s1486_s13 = sphi %s1534_s13, %s2024_s13   ;;  %s1482_s12 = sphi %s1532_s12, %s2023_s12  }
   0x5   : > { %p23_p0 = scmp.ge.s32.totalorder %s22_s19, 2  ;;  %p41_p1 = scmp.ne.s32.totalorder %s1486_s13, %s1482_s12 }
   0x6   : > { %p42_p2 = scmp.eq.s32.totalorder %s1506_s18, 0  ;;  %s34_s24 = sadd.s32 1, %s1486_s13 }
   0x7   : > { %s2030_s19 = smov (%p23_p0, %s22_s19), 0  ;;  %s2032_s20 = smov (!%p23_p0, %s25_s20), %s1502_s17 }
   0x8   : > { %p43_p3 = por %p42_p2, %p41_p1  ;;  %p27_p4 = scmp.ge.s32.totalorder %s2032_s20, 2 }
   0x9   : > { %s30_s21 = ssub.s32 %s1498_s16, %s2030_s19  ;;  %p1257_p6 = scmp.ge.s32.totalorder %s1506_s18, 4 }
   0xa   : > { %s2034_s20 = smov (%p27_p4, %s2032_s20), 0 }
   0xb   : > { %s29_s22 = ssub.s32 %s1502_s17, %s2034_s20  ;;  %141 = sbr.rel (%p1257_p6) target bundleno = 38 (0x26), region = 24 }
   0xc   : > { %s31_s23 = sor.u32 %s30_s21, %s29_s22 }
   0xd   : > { %p32_p5 = scmp.eq.s32.totalorder %s31_s23, 0 }
   0xf   : > { %s1583_s25 = scalar_select %p32_p5, %s1486_s13, %s34_s24  }
  0x10   : > { %144 = sbr.rel (!%p43_p3) target bundleno = 38 (0x26), region = 28  ;;  %s146_s26 = sand.u32 (%p43_p3), 1, %s1486_s13  }
  0x11   : > { %s1259_s27 = sshll.u32 (%p43_p3), %s1502_s17, 5  ;;  %s1258_s28 = sshll.u32 (%p43_p3), %s146_s26, 7 }
  0x12   : > { %s150_s29 = sadd.s32 (%p43_p3), %s1498_s16, %s1259_s27  ;;  %s148_s7 = scalar_lea.vmem (%p43_p3), [#allocation4], %s1258_s28 }
  0x13   : > { %s1260_s30 = sshll.u32 (%p43_p3), %s150_s29, 3 }
  0x14   : > { %s1592_s6 = scalar_lea.vmem (%p43_p3), %s2011_s0, %s1260_s30 }
  0x15   : > { %v211_v0 = vld [vmem:[%s1592_s6] sm:$0xff]  ;;  %v213_v1 = vld [vmem:[%s1592_s6 + $0x10] sm:$0xff] }
  0x16   : > { %v215_v2 = vld [vmem:[%s1592_s6 + $0x20] sm:$0xff]  ;;  %212 = vst [vmem:[%s148_s7] sm:$0xff] %v211_v0  ;;  %v217_v3 = vld [vmem:[%s1592_s6 + $0x30] sm:$0xff] }
  0x17   : > { %214 = vst [vmem:[%s148_s7 + $0x8] sm:$0xff] %v213_v1  ;;  %v219_v4 = vld [vmem:[%s1592_s6 + $0x40] sm:$0xff]  ;;  %v221_v5 = vld [vmem:[%s1592_s6 + $0x50] sm:$0xff] }
  0x18   : > { %216 = vst [vmem:[%s148_s7 + $0x10] sm:$0xff] %v215_v2  ;;  %v223_v6 = vld [vmem:[%s1592_s6 + $0x60] sm:$0xff]  ;;  %v225_v7 = vld [vmem:[%s1592_s6 + $0x70] sm:$0xff] }
  0x19   : > { %218 = vst [vmem:[%s148_s7 + $0x18] sm:$0xff] %v217_v3  ;;  %v227_v8 = vld [vmem:[%s1592_s6 + $0x80] sm:$0xff]  ;;  %v229_v9 = vld [vmem:[%s1592_s6 + $0x90] sm:$0xff] }
  0x1a   : > { %220 = vst [vmem:[%s148_s7 + $0x20] sm:$0xff] %v219_v4  ;;  %v231_v10 = vld [vmem:[%s1592_s6 + $0xa0] sm:$0xff]  ;;  %v233_v11 = vld [vmem:[%s1592_s6 + $0xb0] sm:$0xff] }
  0x1b   : > { %222 = vst [vmem:[%s148_s7 + $0x28] sm:$0xff] %v221_v5  ;;  %v235_v12 = vld [vmem:[%s1592_s6 + $0xc0] sm:$0xff]  ;;  %v237_v13 = vld [vmem:[%s1592_s6 + $0xd0] sm:$0xff] }
  0x1c   : > { %224 = vst [vmem:[%s148_s7 + $0x30] sm:$0xff] %v223_v6  ;;  %v239_v14 = vld [vmem:[%s1592_s6 + $0xe0] sm:$0xff]  ;;  %v241_v15 = vld [vmem:[%s1592_s6 + $0xf0] sm:$0xff] }
  0x1d   : > { %226 = vst [vmem:[%s148_s7 + $0x38] sm:$0xff] %v225_v7 }
  0x1e   : > { %228 = vst [vmem:[%s148_s7 + $0x40] sm:$0xff] %v227_v8 }
  0x1f   : > { %230 = vst [vmem:[%s148_s7 + $0x48] sm:$0xff] %v229_v9 }
  0x20   : > { %232 = vst [vmem:[%s148_s7 + $0x50] sm:$0xff] %v231_v10 }
  0x21   : > { %234 = vst [vmem:[%s148_s7 + $0x58] sm:$0xff] %v233_v11 }
  0x22   : > { %236 = vst [vmem:[%s148_s7 + $0x60] sm:$0xff] %v235_v12 }
  0x23   : > { %238 = vst [vmem:[%s148_s7 + $0x68] sm:$0xff] %v237_v13 }
  0x24   : > { %240 = vst [vmem:[%s148_s7 + $0x70] sm:$0xff] %v239_v14 }
  0x25   : > { %242 = vst [vmem:[%s148_s7 + $0x78] sm:$0xff] %v241_v15 }
  0x26 PF: > { %p1261_p7 = scmp.ge.s32.totalorder %s1506_s18, 1  ;;  %p247_p8 = scmp.lt.s32.totalorder %s1506_s18, 5 }
  0x28   : > { %p248_p9 = pnand %p1261_p7, %p247_p8 }
  0x29   : > { %s254_s8 = sand.u32 (!%p248_p9), 1, %s1482_s12   ;;  %p277_p10 = scmp.lt.s32.totalorder (!%p248_p9), %s1494_s15, 1 }
  0x2a   : > { %251 = sbr.rel (%p248_p9) target bundleno = 908 (0x38c), region = 66  ;;  %s1262_s9 = sshll.u32 (!%p248_p9), %s254_s8, 7 }
  0x2b   : > { %s1620_s23 = scalar_lea.vmem (!%p248_p9), [#allocation4], %s1262_s9  ;;  %p1265_p11 = scmp.ne.s32.totalorder (!%p248_p9), %s1490_s14, 0 }
  0x2f   : > { %s2036_s15 = smov (!%p277_p10, %s1494_s15), 1  ;;  %285 = sbr.rel (%p1265_p11) target bundleno = 85 (0x55), region = 74 }
  0x30   : > { %s1285_s10 = sshll.u32 %s2036_s15, 7 }
  0x31   : > { %s1618_s22 = scalar_lea.vmem %s2014_s3, %s1285_s10 }
  0x34   : > { %vm286_vm0 = vcmask 7168   ;;  %v1508_v16 = vmov 0.0   ;;  %v1509_v17 = vmov -inf  }
  0x35   : > { %287 = vst.msk [vmem:[#allocation2] sm:$0xff] %vm286_vm0, %v1508_v16 }
  0x36   : > { %288 = vst.msk [vmem:[#allocation2 + $0x8] sm:$0xff] %vm286_vm0, %v1508_v16 }
  0x37   : > { %289 = vst.msk [vmem:[#allocation2 + $0x10] sm:$0xff] %vm286_vm0, %v1508_v16 }
  0x38   : > { %290 = vst.msk [vmem:[#allocation2 + $0x18] sm:$0xff] %vm286_vm0, %v1508_v16 }
  0x39   : > { %291 = vst.msk [vmem:[#allocation2 + $0x20] sm:$0xff] %vm286_vm0, %v1508_v16 }
  0x3a   : > { %292 = vst.msk [vmem:[#allocation2 + $0x28] sm:$0xff] %vm286_vm0, %v1508_v16 }
  0x3b   : > { %293 = vst.msk [vmem:[#allocation2 + $0x30] sm:$0xff] %vm286_vm0, %v1508_v16 }
  0x3c   : > { %294 = vst.msk [vmem:[#allocation2 + $0x38] sm:$0xff] %vm286_vm0, %v1508_v16 }
  0x3d   : > { %295 = vst.msk [vmem:[#allocation2 + $0x40] sm:$0xff] %vm286_vm0, %v1508_v16 }
  0x3e   : > { %296 = vst.msk [vmem:[#allocation2 + $0x48] sm:$0xff] %vm286_vm0, %v1508_v16 }
  0x3f   : > { %297 = vst.msk [vmem:[#allocation2 + $0x50] sm:$0xff] %vm286_vm0, %v1508_v16 }
  0x40   : > { %298 = vst.msk [vmem:[#allocation2 + $0x58] sm:$0xff] %vm286_vm0, %v1508_v16 }
  0x41   : > { %299 = vst.msk [vmem:[#allocation2 + $0x60] sm:$0xff] %vm286_vm0, %v1508_v16 }
  0x42   : > { %300 = vst.msk [vmem:[#allocation2 + $0x68] sm:$0xff] %vm286_vm0, %v1508_v16 }
  0x43   : > { %301 = vst.msk [vmem:[#allocation2 + $0x70] sm:$0xff] %vm286_vm0, %v1508_v16 }
  0x44   : > { %302 = vst.msk [vmem:[#allocation2 + $0x78] sm:$0xff] %vm286_vm0, %v1508_v16 }
  0x45   : > { %303 = vst.msk [vmem:[#allocation3] sm:$0xff] %vm286_vm0, %v1509_v17 }
  0x46   : > { %304 = vst.msk [vmem:[#allocation3 + $0x8] sm:$0xff] %vm286_vm0, %v1509_v17 }
  0x47   : > { %305 = vst.msk [vmem:[#allocation3 + $0x10] sm:$0xff] %vm286_vm0, %v1509_v17 }
  0x48   : > { %306 = vst.msk [vmem:[#allocation3 + $0x18] sm:$0xff] %vm286_vm0, %v1509_v17 }
  0x49   : > { %307 = vst.msk [vmem:[#allocation3 + $0x20] sm:$0xff] %vm286_vm0, %v1509_v17 }
  0x4a   : > { %308 = vst.msk [vmem:[#allocation3 + $0x28] sm:$0xff] %vm286_vm0, %v1509_v17 }
  0x4b   : > { %309 = vst.msk [vmem:[#allocation3 + $0x30] sm:$0xff] %vm286_vm0, %v1509_v17 }
  0x4c   : > { %310 = vst.msk [vmem:[#allocation3 + $0x38] sm:$0xff] %vm286_vm0, %v1509_v17 }
  0x4d   : > { %311 = vst.msk [vmem:[#allocation3 + $0x40] sm:$0xff] %vm286_vm0, %v1509_v17 }
  0x4e   : > { %312 = vst.msk [vmem:[#allocation3 + $0x48] sm:$0xff] %vm286_vm0, %v1509_v17 }
  0x4f   : > { %313 = vst.msk [vmem:[#allocation3 + $0x50] sm:$0xff] %vm286_vm0, %v1509_v17 }
  0x50   : > { %314 = vst.msk [vmem:[#allocation3 + $0x58] sm:$0xff] %vm286_vm0, %v1509_v17 }
  0x51   : > { %315 = vst.msk [vmem:[#allocation3 + $0x60] sm:$0xff] %vm286_vm0, %v1509_v17 }
  0x52   : > { %316 = vst.msk [vmem:[#allocation3 + $0x68] sm:$0xff] %vm286_vm0, %v1509_v17 }
  0x53   : > { %317 = vst.msk [vmem:[#allocation3 + $0x70] sm:$0xff] %vm286_vm0, %v1509_v17 }
  0x54   : > { %318 = vst.msk [vmem:[#allocation3 + $0x78] sm:$0xff] %vm286_vm0, %v1509_v17 }
  0x55 PF: > { %v321_v18 = vld [vmem:[%s1620_s23 + $0x10] sm:$0xff]  ;;  %v319_v19 = vld [vmem:[%s1620_s23] sm:$0xff]  ;;  %v322_v21 = vld [vmem:[%s1620_s23 + $0x18] sm:$0xff]  ;;  %vm399_vm1 = vcmask 7168   ;;  %p1266_p12 = scmp.ne.s32.totalorder %s1490_s14, 1 }
  0x56   : > { %v323_v20 = vld [vmem:[%s1620_s23 + $0x20] sm:$0xff]  ;;  %355 = vadd.xlane.f32.xlu1 %v321_v18  ;;  %351 = vadd.xlane.f32.xlu0 %v319_v19  ;;  %v320_v22 = vld [vmem:[%s1620_s23 + $0x8] sm:$0xff]  ;;  %v326_v24 = vld [vmem:[%s1620_s23 + $0x38] sm:$0xff]  ;;  %s1510_s12 = smov (!%p1266_p12), 1   ;;  %s1511_s11 = smov (!%p1266_p12), 127  }
  0x57   : > { %359 = vadd.xlane.f32.xlu2 %v323_v20  ;;  %v324_v23 = vld [vmem:[%s1620_s23 + $0x28] sm:$0xff]  ;;  %v325_v25 = vld [vmem:[%s1620_s23 + $0x30] sm:$0xff]  ;;  %v327_v26 = vld [vmem:[%s1620_s23 + $0x40] sm:$0xff] }
  0x58   : > { %v329_v27 = vld [vmem:[%s1620_s23 + $0x50] sm:$0xff]  ;;  %v328_v28 = vld [vmem:[%s1620_s23 + $0x48] sm:$0xff]  ;;  %v330_v29 = vld [vmem:[%s1620_s23 + $0x58] sm:$0xff] }
  0x59   : > { %v332_v30 = vld [vmem:[%s1620_s23 + $0x68] sm:$0xff]  ;;  %v331_v31 = vld [vmem:[%s1620_s23 + $0x60] sm:$0xff]  ;;  %v333_v32 = vld [vmem:[%s1620_s23 + $0x70] sm:$0xff] }
  0x5a   : > { %v334_v33 = vld [vmem:[%s1620_s23 + $0x78] sm:$0xff]  ;;  %v337_v34 = vld [vmem:[#allocation2 + $0x10] sm:$0xff]  ;;  %v335_v35 = vld [vmem:[#allocation2] sm:$0xff] }
  0x5b   : > { %v339_v36 = vld [vmem:[#allocation2 + $0x20] sm:$0xff]  ;;  %v338_v43 = vld [vmem:[#allocation2 + $0x18] sm:$0xff]  ;;  %v336_v44 = vld [vmem:[#allocation2 + $0x8] sm:$0xff] }
  0x5c   : > { %v340_v45 = vld [vmem:[#allocation2 + $0x28] sm:$0xff]  ;;  %v342_v52 = vld [vmem:[#allocation2 + $0x38] sm:$0xff]  ;;  %v341_v53 = vld [vmem:[#allocation2 + $0x30] sm:$0xff] }
  0x5d   : > { %v343_v54 = vld [vmem:[#allocation2 + $0x40] sm:$0xff]  ;;  %v345_v61 = vld [vmem:[#allocation2 + $0x50] sm:$0xff]  ;;  %v344_v62 = vld [vmem:[#allocation2 + $0x48] sm:$0xff] }
  0x5e   : > { %357 = vadd.xlane.f32.xlu1 %v322_v21  ;;  %353 = vadd.xlane.f32.xlu0 %v320_v22  ;;  %v346_v63 = vld [vmem:[#allocation2 + $0x58] sm:$0xff]  ;;  %v348_v6 = vld [vmem:[#allocation2 + $0x68] sm:$0xff]  ;;  %v347_v7 = vld [vmem:[#allocation2 + $0x60] sm:$0xff] }
  0x5f   : > { %361 = vadd.xlane.f32.xlu2 %v324_v23  ;;  %v349_v8 = vld [vmem:[#allocation2 + $0x70] sm:$0xff]  ;;  %v416_v15 = vld [vmem:[#allocation3] sm:$0xff]  ;;  %v350_v16 = vld [vmem:[#allocation2 + $0x78] sm:$0xff] }
  0x60   : > { %v417_v17 = vld [vmem:[#allocation3 + $0x8] sm:$0xff] }
  0x66   : > { %365 = vadd.xlane.f32.xlu1 %v326_v24  ;;  %363 = vadd.xlane.f32.xlu0 %v325_v25 }
  0x67   : > { %367 = vadd.xlane.f32.xlu2 %v327_v26 }
  0x6e   : > { %371 = vadd.xlane.f32.xlu1 %v329_v27  ;;  %369 = vadd.xlane.f32.xlu0 %v328_v28 }
  0x6f   : > { %373 = vadd.xlane.f32.xlu2 %v330_v29 }
  0x76   : > { %377 = vadd.xlane.f32.xlu1 %v332_v30  ;;  %375 = vadd.xlane.f32.xlu0 %v331_v31 }
  0x77   : > { %379 = vadd.xlane.f32.xlu2 %v333_v32 }
  0x7e   : > { %432 = vmax.xlane.f32.xlu1 %v319_v19  ;;  %381 = vadd.xlane.f32.xlu0 %v334_v33 }
  0x7f   : > { %434 = vmax.xlane.f32.xlu2 %v320_v22 }
  0x86   : > { %438 = vmax.xlane.f32.xlu1 %v322_v21  ;;  %436 = vmax.xlane.f32.xlu0 %v321_v18 }
  0x87   : > { %440 = vmax.xlane.f32.xlu2 %v323_v20 }
  0x8e   : > { %444 = vmax.xlane.f32.xlu1 %v325_v25  ;;  %442 = vmax.xlane.f32.xlu0 %v324_v23  ;;  %v418_v25 = vld [vmem:[#allocation3 + $0x10] sm:$0xff] }
  0x8f   : > { %446 = vmax.xlane.f32.xlu2 %v326_v24  ;;  %v419_v24 = vld [vmem:[#allocation3 + $0x18] sm:$0xff] }
  0x96   : > { %450 = vmax.xlane.f32.xlu1 %v328_v28  ;;  %448 = vmax.xlane.f32.xlu0 %v327_v26  ;;  %v420_v26 = vld [vmem:[#allocation3 + $0x20] sm:$0xff] }
  0x97   : > { %452 = vmax.xlane.f32.xlu2 %v329_v27 }
  0x9e   : > { %456 = vmax.xlane.f32.xlu1 %v331_v31  ;;  %454 = vmax.xlane.f32.xlu0 %v330_v29 }
  0x9f   : > { %458 = vmax.xlane.f32.xlu2 %v332_v30 }
  0xa6   : > { %462 = vmax.xlane.f32.xlu1 %v334_v33  ;;  %460 = vmax.xlane.f32.xlu0 %v333_v32  ;;  %v422_v33 = vld [vmem:[#allocation3 + $0x30] sm:$0xff] }
  0xc9   : > { %v356_v37 = vpop.xlane.xlu1 %355  ;;  %v352_v38 = vpop.xlane.xlu0 %351 }
  0xca   : > { %v385_v39 = vadd.f32 %v356_v37, %v337_v34  ;;  %v383_v40 = vadd.f32 %v352_v38, %v335_v35  ;;  %v360_v41 = vpop.xlane.xlu2 %359  ;;  %v421_v34 = vld [vmem:[#allocation3 + $0x28] sm:$0xff]  ;;  %v423_v35 = vld [vmem:[#allocation3 + $0x38] sm:$0xff] }
  0xcb   : > { %v387_v42 = vadd.f32 %v360_v41, %v339_v36 }
  0xcc   : > { %402 = vst.msk [vmem:[#allocation2 + $0x10] sm:$0xff] %vm399_vm1, %v385_v39 }
  0xcd   : > { %400 = vst.msk [vmem:[#allocation2] sm:$0xff] %vm399_vm1, %v383_v40 }
  0xce   : > { %404 = vst.msk [vmem:[#allocation2 + $0x20] sm:$0xff] %vm399_vm1, %v387_v42  ;;  %v425_v42 = vld [vmem:[#allocation3 + $0x48] sm:$0xff] }
  0xd1   : > { %v358_v46 = vpop.xlane.xlu1 %357  ;;  %v354_v47 = vpop.xlane.xlu0 %353 }
  0xd2   : > { %v386_v48 = vadd.f32 %v358_v46, %v338_v43  ;;  %v384_v49 = vadd.f32 %v354_v47, %v336_v44  ;;  %v362_v50 = vpop.xlane.xlu2 %361  ;;  %v424_v43 = vld [vmem:[#allocation3 + $0x40] sm:$0xff]  ;;  %v426_v44 = vld [vmem:[#allocation3 + $0x50] sm:$0xff] }
  0xd3   : > { %v388_v51 = vadd.f32 %v362_v50, %v340_v45 }
  0xd4   : > { %403 = vst.msk [vmem:[#allocation2 + $0x18] sm:$0xff] %vm399_vm1, %v386_v48 }
  0xd5   : > { %401 = vst.msk [vmem:[#allocation2 + $0x8] sm:$0xff] %vm399_vm1, %v384_v49 }
  0xd6   : > { %405 = vst.msk [vmem:[#allocation2 + $0x28] sm:$0xff] %vm399_vm1, %v388_v51  ;;  %v428_v51 = vld [vmem:[#allocation3 + $0x60] sm:$0xff] }
  0xd9   : > { %v366_v55 = vpop.xlane.xlu1 %365  ;;  %v364_v56 = vpop.xlane.xlu0 %363 }
  0xda   : > { %v390_v57 = vadd.f32 %v366_v55, %v342_v52  ;;  %v389_v58 = vadd.f32 %v364_v56, %v341_v53  ;;  %v368_v59 = vpop.xlane.xlu2 %367  ;;  %v427_v52 = vld [vmem:[#allocation3 + $0x58] sm:$0xff]  ;;  %v429_v53 = vld [vmem:[#allocation3 + $0x68] sm:$0xff] }
  0xdb   : > { %v391_v60 = vadd.f32 %v368_v59, %v343_v54 }
  0xdc   : > { %407 = vst.msk [vmem:[#allocation2 + $0x38] sm:$0xff] %vm399_vm1, %v390_v57 }
  0xdd   : > { %406 = vst.msk [vmem:[#allocation2 + $0x30] sm:$0xff] %vm399_vm1, %v389_v58 }
  0xde   : > { %408 = vst.msk [vmem:[#allocation2 + $0x40] sm:$0xff] %vm399_vm1, %v391_v60  ;;  %v431_v60 = vld [vmem:[#allocation3 + $0x78] sm:$0xff] }
  0xe1   : > { %v372_v0 = vpop.xlane.xlu1 %371  ;;  %v370_v1 = vpop.xlane.xlu0 %369 }
  0xe2   : > { %v393_v2 = vadd.f32 %v372_v0, %v345_v61  ;;  %v392_v3 = vadd.f32 %v370_v1, %v344_v62  ;;  %v374_v4 = vpop.xlane.xlu2 %373  ;;  %v430_v61 = vld [vmem:[#allocation3 + $0x70] sm:$0xff] }
  0xe3   : > { %v394_v5 = vadd.f32 %v374_v4, %v346_v63 }
  0xe4   : > { %410 = vst.msk [vmem:[#allocation2 + $0x50] sm:$0xff] %vm399_vm1, %v393_v2 }
  0xe5   : > { %409 = vst.msk [vmem:[#allocation2 + $0x48] sm:$0xff] %vm399_vm1, %v392_v3 }
  0xe6   : > { %411 = vst.msk [vmem:[#allocation2 + $0x58] sm:$0xff] %vm399_vm1, %v394_v5 }
  0xe9   : > { %v378_v9 = vpop.xlane.xlu1 %377  ;;  %v376_v10 = vpop.xlane.xlu0 %375 }
  0xea   : > { %v396_v11 = vadd.f32 %v378_v9, %v348_v6  ;;  %v395_v12 = vadd.f32 %v376_v10, %v347_v7  ;;  %v380_v13 = vpop.xlane.xlu2 %379 }
  0xeb   : > { %v397_v14 = vadd.f32 %v380_v13, %v349_v8 }
  0xec   : > { %413 = vst.msk [vmem:[#allocation2 + $0x68] sm:$0xff] %vm399_vm1, %v396_v11 }
  0xed   : > { %412 = vst.msk [vmem:[#allocation2 + $0x60] sm:$0xff] %vm399_vm1, %v395_v12 }
  0xee   : > { %414 = vst.msk [vmem:[#allocation2 + $0x70] sm:$0xff] %vm399_vm1, %v397_v14 }
  0xf1   : > { %v433_v18 = vpop.xlane.xlu1 %432  ;;  %v382_v19 = vpop.xlane.xlu0 %381 }
  0xf2   : > { %v464_v20 = vmax.f32 %v416_v15, %v433_v18  ;;  %v398_v21 = vadd.f32 %v382_v19, %v350_v16  ;;  %v435_v22 = vpop.xlane.xlu2 %434 }
  0xf3   : > { %v465_v23 = vmax.f32 %v417_v17, %v435_v22 }
  0xf4   : > { %480 = vst.msk [vmem:[#allocation3] sm:$0xff] %vm399_vm1, %v464_v20 }
  0xf5   : > { %415 = vst.msk [vmem:[#allocation2 + $0x78] sm:$0xff] %vm399_vm1, %v398_v21 }
  0xf6   : > { %481 = vst.msk [vmem:[#allocation3 + $0x8] sm:$0xff] %vm399_vm1, %v465_v23 }
  0xf9   : > { %v439_v27 = vpop.xlane.xlu1 %438  ;;  %v437_v28 = vpop.xlane.xlu0 %436 }
  0xfa   : > { %v467_v29 = vmax.f32 %v419_v24, %v439_v27  ;;  %v466_v30 = vmax.f32 %v418_v25, %v437_v28  ;;  %v441_v31 = vpop.xlane.xlu2 %440 }
  0xfb   : > { %v468_v32 = vmax.f32 %v420_v26, %v441_v31 }
  0xfc   : > { %483 = vst.msk [vmem:[#allocation3 + $0x18] sm:$0xff] %vm399_vm1, %v467_v29 }
  0xfd   : > { %482 = vst.msk [vmem:[#allocation3 + $0x10] sm:$0xff] %vm399_vm1, %v466_v30 }
  0xfe   : > { %484 = vst.msk [vmem:[#allocation3 + $0x20] sm:$0xff] %vm399_vm1, %v468_v32 }
 0x101   : > { %v445_v36 = vpop.xlane.xlu1 %444  ;;  %v443_v37 = vpop.xlane.xlu0 %442 }
 0x102   : > { %v470_v38 = vmax.f32 %v422_v33, %v445_v36  ;;  %v469_v39 = vmax.f32 %v421_v34, %v443_v37  ;;  %v447_v40 = vpop.xlane.xlu2 %446 }
 0x103   : > { %v471_v41 = vmax.f32 %v423_v35, %v447_v40 }
 0x104   : > { %486 = vst.msk [vmem:[#allocation3 + $0x30] sm:$0xff] %vm399_vm1, %v470_v38 }
 0x105   : > { %485 = vst.msk [vmem:[#allocation3 + $0x28] sm:$0xff] %vm399_vm1, %v469_v39 }
 0x106   : > { %487 = vst.msk [vmem:[#allocation3 + $0x38] sm:$0xff] %vm399_vm1, %v471_v41 }
 0x109   : > { %v451_v45 = vpop.xlane.xlu1 %450  ;;  %v449_v46 = vpop.xlane.xlu0 %448 }
 0x10a   : > { %v473_v47 = vmax.f32 %v425_v42, %v451_v45  ;;  %v472_v48 = vmax.f32 %v424_v43, %v449_v46  ;;  %v453_v49 = vpop.xlane.xlu2 %452 }
 0x10b   : > { %v474_v50 = vmax.f32 %v426_v44, %v453_v49 }
 0x10c   : > { %489 = vst.msk [vmem:[#allocation3 + $0x48] sm:$0xff] %vm399_vm1, %v473_v47 }
 0x10d   : > { %488 = vst.msk [vmem:[#allocation3 + $0x40] sm:$0xff] %vm399_vm1, %v472_v48 }
 0x10e   : > { %490 = vst.msk [vmem:[#allocation3 + $0x50] sm:$0xff] %vm399_vm1, %v474_v50 }
 0x111   : > { %v457_v54 = vpop.xlane.xlu1 %456  ;;  %v455_v55 = vpop.xlane.xlu0 %454 }
 0x112   : > { %v476_v56 = vmax.f32 %v428_v51, %v457_v54  ;;  %v475_v57 = vmax.f32 %v427_v52, %v455_v55  ;;  %v459_v58 = vpop.xlane.xlu2 %458 }
 0x113   : > { %v477_v59 = vmax.f32 %v429_v53, %v459_v58 }
 0x114   : > { %492 = vst.msk [vmem:[#allocation3 + $0x60] sm:$0xff] %vm399_vm1, %v476_v56 }
 0x115   : > { %491 = vst.msk [vmem:[#allocation3 + $0x58] sm:$0xff] %vm399_vm1, %v475_v57 }
 0x116   : > { %493 = vst.msk [vmem:[#allocation3 + $0x68] sm:$0xff] %vm399_vm1, %v477_v59 }
 0x119   : > { %v463_v62 = vpop.xlane.xlu1 %462  ;;  %v461_v63 = vpop.xlane.xlu0 %460  ;;  %499 = sbr.rel (%p1266_p12) target bundleno = 908 (0x38c), region = 78 }
 0x11a   : > { %v479_v0 = vmax.f32 %v431_v60, %v463_v62  ;;  %v478_v1 = vmax.f32 %v430_v61, %v461_v63 }
 0x11c   : > { %495 = vst.msk [vmem:[#allocation3 + $0x78] sm:$0xff] %vm399_vm1, %v479_v0 }
 0x11d   : > { %494 = vst.msk [vmem:[#allocation3 + $0x70] sm:$0xff] %vm399_vm1, %v478_v1 }
 0x11e   : > { %v542_v5 = vld [vmem:[#allocation3 + $0x50] sm:$0xff]  ;;  %v543_v6 = vld [vmem:[#allocation3 + $0x58] sm:$0xff]  ;;  %v544_v8 = vld [vmem:[#allocation3 + $0x60] sm:$0xff]  ;;  %vm666_vm2 = vcmask 64512  }
 0x11f   : > { %v1358_v7 = vpack.i.bf16 %v542_v5, %v543_v6  ;;  %v545_v9 = vld [vmem:[#allocation3 + $0x68] sm:$0xff]  ;;  %v538_v10 = vld [vmem:[#allocation3 + $0x30] sm:$0xff]  ;;  %v539_v11 = vld [vmem:[#allocation3 + $0x38] sm:$0xff] }
 0x120   : > { %v540_v12 = vld [vmem:[#allocation3 + $0x40] sm:$0xff]  ;;  %v541_v13 = vld [vmem:[#allocation3 + $0x48] sm:$0xff]  ;;  %v1368_v14 = vpack.i.bf16 %v538_v10, %v539_v11  ;;  %v1353_v15 = vpack.i.bf16 %v544_v8, %v545_v9  ;;  %v534_v20 = vld [vmem:[#allocation3 + $0x10] sm:$0xff] }
 0x121   : > { %1359 = vrot.lane.b32.xlu1 %v1358_v7, %s1510_s12  ;;  %v1363_v16 = vpack.i.bf16 %v540_v12, %v541_v13  ;;  %v536_v17 = vld [vmem:[#allocation3 + $0x20] sm:$0xff]  ;;  %v537_v18 = vld [vmem:[#allocation3 + $0x28] sm:$0xff]  ;;  %v535_v21 = vld [vmem:[#allocation3 + $0x18] sm:$0xff] }
 0x122   : > { %1369 = vrot.lane.b32.xlu2 %v1368_v14, %s1510_s12  ;;  %v1373_v19 = vpack.i.bf16 %v536_v17, %v537_v18  ;;  %v532_v22 = vld [vmem:[#allocation3] sm:$0xff]  ;;  %v533_v23 = vld [vmem:[#allocation3 + $0x8] sm:$0xff]  ;;  %v1378_v24 = vpack.i.bf16 %v534_v20, %v535_v21  ;;  %v515_v26 = vld [vmem:[#allocation2 + $0x78] sm:$0xff] }
 0x123   : > { %v547_v3 = vld [vmem:[#allocation3 + $0x78] sm:$0xff]  ;;  %v1383_v25 = vpack.i.bf16 %v532_v22, %v533_v23  ;;  %v514_v27 = vld [vmem:[#allocation2 + $0x70] sm:$0xff]  ;;  %v531_v28 = vmul.f32 0.00390625, %v515_v26  ;;  %v513_v35 = vld [vmem:[#allocation2 + $0x68] sm:$0xff] }
 0x124   : > { %v546_v2 = vld [vmem:[#allocation3 + $0x70] sm:$0xff]  ;;  %v530_v32 = vmul.f32 0.00390625, %v514_v27  ;;  %v512_v37 = vld [vmem:[#allocation2 + $0x60] sm:$0xff]  ;;  %v529_v38 = vmul.f32 0.00390625, %v513_v35  ;;  %v511_v41 = vld [vmem:[#allocation2 + $0x58] sm:$0xff] }
 0x125   : > { %v1348_v4 = vpack.i.bf16 %v546_v2, %v547_v3  ;;  %v528_v44 = vmul.f32 0.00390625, %v512_v37  ;;  %v510_v45 = vld [vmem:[#allocation2 + $0x50] sm:$0xff]  ;;  %v509_v47 = vld [vmem:[#allocation2 + $0x48] sm:$0xff]  ;;  %v527_v50 = vmul.f32 0.00390625, %v511_v41  ;;  %v508_v56 = vld [vmem:[#allocation2 + $0x40] sm:$0xff] }
 0x126   : > { %v526_v51 = vmul.f32 0.00390625, %v510_v45  ;;  %v525_v55 = vmul.f32 0.00390625, %v509_v47  ;;  %v507_v58 = vld [vmem:[#allocation2 + $0x38] sm:$0xff]  ;;  %v524_v62 = vmul.f32 0.00390625, %v508_v56  ;;  %v506_v0 = vld [vmem:[#allocation2 + $0x30] sm:$0xff]  ;;  %v505_v1 = vld [vmem:[#allocation2 + $0x28] sm:$0xff] }
 0x127   : > { %1349 = vrot.lane.b32.xlu0 %v1348_v4, %s1510_s12  ;;  %v523_v3 = vmul.f32 0.00390625, %v507_v58  ;;  %v522_v7 = vmul.f32 0.00390625, %v506_v0  ;;  %v521_v8 = vmul.f32 0.00390625, %v505_v1  ;;  %v504_v9 = vld [vmem:[#allocation2 + $0x20] sm:$0xff]  ;;  %v503_v11 = vld [vmem:[#allocation2 + $0x18] sm:$0xff]  ;;  %v501_v21 = vld [vmem:[#allocation2 + $0x8] sm:$0xff] }
 0x128   : > { %v520_v14 = vmul.f32 0.00390625, %v504_v9  ;;  %v519_v18 = vmul.f32 0.00390625, %v503_v11  ;;  %v517_v27 = vmul.f32 0.00390625, %v501_v21  ;;  %v629_v37 = vld [vmem:[%s2013_s2] sm:$0xff]  ;;  %v636_v41 = vld [vmem:[%s2013_s2 + $0x38] sm:$0xff]  ;;  %v643_v45 = vld [vmem:[%s2013_s2 + $0x70] sm:$0xff] }
 0x129   : > { %1364 = vrot.lane.b32.xlu1 %v1363_v16, %s1510_s12  ;;  %v638_v47 = vld [vmem:[%s2013_s2 + $0x48] sm:$0xff] }
 0x12a   : > { %1374 = vrot.lane.b32.xlu2 %v1373_v19, %s1510_s12  ;;  %v502_v19 = vld [vmem:[#allocation2 + $0x10] sm:$0xff] }
 0x12b   : > { %v518_v23 = vmul.f32 0.00390625, %v502_v19 }
 0x12f   : > { %1354 = vrot.lane.b32.xlu0 %v1353_v15, %s1510_s12 }
 0x131   : > { %1384 = vrot.lane.b32.xlu1 %v1383_v25, %s1510_s12 }
 0x137   : > { %1379 = vrot.lane.b32.xlu0 %v1378_v24, %s1510_s12 }
 0x17c   : > { %v1370_v40 = vpop.permute.xlu2 %1369 }
 0x17d   : > { %v1371_v2 = vunpack.i.l.bf16 %v1370_v40  ;;  %v1372_v4 = vunpack.i.h.bf16 %v1370_v40  ;;  %v630_v40 = vld [vmem:[%s2013_s2 + $0x8] sm:$0xff] }
 0x17f   : > { %v619_v12 = vsel %vm399_vm1, %v523_v3, %v1371_v2  ;;  %v618_v15 = vsel %vm399_vm1, %v522_v7, %v1372_v4 }
 0x184   : > { %v1375_v63 = vpop.permute.xlu2 %1374 }
 0x185   : > { %v1376_v6 = vunpack.i.l.bf16 %v1375_v63  ;;  %v1377_v13 = vunpack.i.h.bf16 %v1375_v63 }
 0x187   : > { %v617_v17 = vsel %vm399_vm1, %v521_v8, %v1376_v6  ;;  %v616_v22 = vsel %vm399_vm1, %v520_v14, %v1377_v13 }
 0x193   : > { %v1360_v33 = vpop.permute.xlu1 %1359 }
 0x194   : > { %v1361_v48 = vunpack.i.l.bf16 %v1360_v33  ;;  %v1362_v52 = vunpack.i.h.bf16 %v1360_v33  ;;  %v628_v33 = vld [vmem:[%s2012_s1] sm:$0xff] }
 0x196   : > { %v623_v57 = vsel %vm399_vm1, %v527_v50, %v1361_v48  ;;  %v622_v60 = vsel %vm399_vm1, %v526_v51, %v1362_v52  ;;  %v644_v48 = vld [vmem:[%s2013_s2 + $0x78] sm:$0xff]  ;;  %v639_v50 = vld [vmem:[%s2013_s2 + $0x50] sm:$0xff]  ;;  %v634_v51 = vld [vmem:[%s2013_s2 + $0x28] sm:$0xff] }
 0x197   : > { %v640_v52 = vld [vmem:[%s2013_s2 + $0x58] sm:$0xff] }
 0x199   : > { %v1350_v29 = vpop.permute.xlu0 %1349 }
 0x19a   : > { %v1352_v30 = vunpack.i.h.bf16 %v1350_v29  ;;  %v1351_v31 = vunpack.i.l.bf16 %v1350_v29 }
 0x19b   : > { %v1365_v46 = vpop.permute.xlu1 %1364 }
 0x19c   : > { %v627_v34 = vsel %vm399_vm1, %v531_v28, %v1351_v31  ;;  %v626_v36 = vsel %vm399_vm1, %v530_v32, %v1352_v30  ;;  %v1366_v54 = vunpack.i.l.bf16 %v1365_v46  ;;  %v1367_v59 = vunpack.i.h.bf16 %v1365_v46  ;;  %v500_v28 = vld [vmem:[#allocation2] sm:$0xff]  ;;  %v632_v46 = vld [vmem:[%s2013_s2 + $0x18] sm:$0xff] }
 0x19d   : > { %645 = vmatpush.msra.mxu0 %v627_v34  ;;  %v516_v32 = vmul.f32 0.00390625, %v500_v28 }
 0x19e   : > { %v621_v61 = vsel %vm399_vm1, %v525_v55, %v1366_v54  ;;  %v620_v5 = vsel %vm399_vm1, %v524_v62, %v1367_v59 }
 0x19f   : > { %646 = vmatpush.msra.mxu0 %v626_v36 }
 0x1a1   : > { %v1355_v39 = vpop.permute.xlu0 %1354 }
 0x1a2   : > { %v1357_v42 = vunpack.i.h.bf16 %v1355_v39  ;;  %v1356_v43 = vunpack.i.l.bf16 %v1355_v39  ;;  %v641_v39 = vld [vmem:[%s2013_s2 + $0x60] sm:$0xff] }
 0x1a3   : > { %v1385_v20 = vpop.permute.xlu1 %1384 }
 0x1a4   : > { %v625_v49 = vsel %vm399_vm1, %v529_v38, %v1356_v43  ;;  %v624_v53 = vsel %vm399_vm1, %v528_v44, %v1357_v42  ;;  %v1386_v25 = vunpack.i.l.bf16 %v1385_v20  ;;  %v1387_v29 = vunpack.i.h.bf16 %v1385_v20  ;;  %v635_v38 = vld [vmem:[%s2013_s2 + $0x30] sm:$0xff]  ;;  %v642_v42 = vld [vmem:[%s2013_s2 + $0x68] sm:$0xff]  ;;  %v637_v44 = vld [vmem:[%s2013_s2 + $0x40] sm:$0xff] }
 0x1a5   : > { %647 = vmatpush.msra.mxu0 %v625_v49  ;;  %v631_v43 = vld [vmem:[%s2013_s2 + $0x10] sm:$0xff]  ;;  %v633_v49 = vld [vmem:[%s2013_s2 + $0x20] sm:$0xff] }
 0x1a6   : > { %v613_v31 = vsel %vm399_vm1, %v517_v27, %v1386_v25  ;;  %v612_v34 = vsel %vm399_vm1, %v516_v32, %v1387_v29 }
 0x1a7   : > { %648 = vmatpush.msra.mxu0 %v624_v53 }
 0x1a9   : > { %649 = vmatpush.msra.mxu0 %v623_v57  ;;  %v1380_v10 = vpop.permute.xlu0 %1379 }
 0x1aa   : > { %v1381_v16 = vunpack.i.l.bf16 %v1380_v10  ;;  %v1382_v24 = vunpack.i.h.bf16 %v1380_v10 }
 0x1ab   : > { %650 = vmatpush.msra.mxu0 %v622_v60 }
 0x1ac   : > { %v615_v26 = vsel %vm399_vm1, %v519_v18, %v1381_v16  ;;  %v614_v30 = vsel %vm399_vm1, %v518_v23, %v1382_v24 }
 0x1ad   : > { %651 = vmatpush.msra.mxu0 %v621_v61 }
 0x1af   : > { %652 = vmatpush.msra.mxu0 %v620_v5 }
 0x1b1   : > { %653 = vmatpush.msra.mxu0 %v619_v12 }
 0x1b3   : > { %654 = vmatpush.msra.mxu0 %v618_v15 }
 0x1b5   : > { %655 = vmatpush.msra.mxu0 %v617_v17 }
 0x1b7   : > { %656 = vmatpush.msra.mxu0 %v616_v22 }
 0x1b9   : > { %657 = vmatpush.msra.mxu0 %v615_v26 }
 0x1bb   : > { %658 = vmatpush.msra.mxu0 %v614_v30 }
 0x1bd   : > { %659 = vmatpush.msra.mxu0 %v613_v31 }
 0x1bf   : > { %660 = vmatpush.msra.mxu0 %v612_v34 }
 0x1c0   : > { %661 = vmatmul.f32.vlgmr.msra.gmra.mxu0 %v628_v33 }
 0x23d   : > { %v662_v35 = vpop.f32.mrf.mxu0 }
 0x23e   : > { %v665_v36 = vmax.f32 %v662_v35, 0.0 }
 0x240   : > { %730 = vmatpush.msra.mxu1 %v665_v36  ;;  %1286 = vmatpush.msra.mxu2 %v665_v36 }
 0x241   : > { %1287 = vmatpush.msra.mxu3 %v665_v36  ;;  %1267 = vmatmul.msk.f32.vlgmr.msra.gmra.mxu1 %vm666_vm2, %v629_v37 }
 0x242   : > { %1273 = vmatmul.msk.f32.vlgmr.msra.gmra.mxu2 %vm666_vm2, %v635_v38  ;;  %1279 = vmatmul.msk.f32.vlgmr.msra.gmra.mxu3 %vm666_vm2, %v641_v39 }
 0x249   : > { %1268 = vmatmul.msk.f32.gmra.mxu1 %vm666_vm2, %v630_v40 }
 0x24a   : > { %1274 = vmatmul.msk.f32.gmra.mxu2 %vm666_vm2, %v636_v41  ;;  %1280 = vmatmul.msk.f32.gmra.mxu3 %vm666_vm2, %v642_v42 }
 0x251   : > { %1269 = vmatmul.msk.f32.gmra.mxu1 %vm666_vm2, %v631_v43 }
 0x252   : > { %1275 = vmatmul.msk.f32.gmra.mxu2 %vm666_vm2, %v637_v44  ;;  %1281 = vmatmul.msk.f32.gmra.mxu3 %vm666_vm2, %v643_v45 }
 0x259   : > { %1270 = vmatmul.msk.f32.gmra.mxu1 %vm666_vm2, %v632_v46 }
 0x25a   : > { %1276 = vmatmul.msk.f32.gmra.mxu2 %vm666_vm2, %v638_v47  ;;  %1282 = vmatmul.msk.f32.gmra.mxu3 %vm666_vm2, %v644_v48 }
 0x261   : > { %1271 = vmatmul.msk.f32.gmra.mxu1 %vm666_vm2, %v633_v49 }
 0x262   : > { %1277 = vmatmul.msk.f32.gmra.mxu2 %vm666_vm2, %v639_v50 }
 0x269   : > { %1272 = vmatmul.msk.f32.gmra.mxu1 %vm666_vm2, %v634_v51 }
 0x26a   : > { %1278 = vmatmul.msk.f32.gmra.mxu2 %vm666_vm2, %v640_v52 }
 0x2be   : > { %v732_v53 = vpop.f32.mrf.mxu1 }
 0x2bf   : > { %796 = vrot.lane.b32.xlu2 %v732_v53, %s1511_s11 }
 0x2c5   : > { %v750_v54 = vpop.f32.mrf.mxu2  ;;  %v768_v56 = vpop.f32.mrf.mxu3 }
 0x2c6   : > { %v1788_v55 = vpop.f32.mrf.mxu1 }
 0x2c7   : > { %808 = vrot.lane.b32.xlu2 %v750_v54, %s1511_s11  ;;  %798 = vrot.lane.b32.xlu0 %v1788_v55, %s1511_s11 }
 0x2cd   : > { %v1793_v57 = vpop.f32.mrf.mxu2  ;;  %v1802_v59 = vpop.f32.mrf.mxu3 }
 0x2ce   : > { %v1795_v58 = vpop.f32.mrf.mxu1 }
 0x2cf   : > { %820 = vrot.lane.b32.xlu2 %v768_v56, %s1511_s11  ;;  %810 = vrot.lane.b32.xlu0 %v1793_v57, %s1511_s11 }
 0x2d0   : > { %800 = vrot.lane.b32.xlu1 %v1795_v58, %s1511_s11 }
 0x2d5   : > { %v1804_v60 = vpop.f32.mrf.mxu2  ;;  %v1809_v62 = vpop.f32.mrf.mxu3 }
 0x2d6   : > { %v741_v61 = vpop.f32.mrf.mxu1 }
 0x2d7   : > { %802 = vrot.lane.b32.xlu2 %v741_v61, %s1511_s11 }
 0x2d8   : > { %812 = vrot.lane.b32.xlu1 %v1804_v60, %s1511_s11 }
 0x2dd   : > { %v1811_v63 = vpop.f32.mrf.mxu2  ;;  %v1819_v1 = vpop.f32.mrf.mxu3 }
 0x2de   : > { %v1813_v0 = vpop.f32.mrf.mxu1 }
 0x2df   : > { %814 = vrot.lane.b32.xlu2 %v1811_v63, %s1511_s11  ;;  %804 = vrot.lane.b32.xlu0 %v1813_v0, %s1511_s11 }
 0x2e5   : > { %v1821_v2 = vpop.f32.mrf.mxu2 }
 0x2e6   : > { %v1823_v3 = vpop.f32.mrf.mxu1 }
 0x2e7   : > { %826 = vrot.lane.b32.xlu2 %v1819_v1, %s1511_s11  ;;  %816 = vrot.lane.b32.xlu0 %v1821_v2, %s1511_s11 }
 0x2e8   : > { %806 = vrot.lane.b32.xlu1 %v1823_v3, %s1511_s11 }
 0x2ed   : > { %v1831_v4 = vpop.f32.mrf.mxu2 }
 0x2ef   : > { %822 = vrot.lane.b32.xlu0 %v1802_v59, %s1511_s11 }
 0x2f0   : > { %818 = vrot.lane.b32.xlu1 %v1831_v4, %s1511_s11 }
 0x2f8   : > { %824 = vrot.lane.b32.xlu1 %v1809_v62, %s1511_s11 }
 0x319   : > { %v797_v5 = vpop.permute.xlu2 %796 }
 0x31a   : > { %v844_v6 = vadd.f32 %v797_v5, %v732_v53 }
 0x31c   : > { %v860_v7 = vsub.f32 0.0, %v844_v6 }
 0x31e   : > { %v876_v8 = vmul.f32 1.442695, %v860_v7 }
 0x320   : > { %1388 = vpow2.f32 %v876_v8 }
 0x321   : > { %v809_v9 = vpop.permute.xlu2 %808 }
 0x322   : > { %v850_v10 = vadd.f32 %v809_v9, %v750_v54 }
 0x324   : > { %v866_v11 = vsub.f32 0.0, %v850_v10 }
 0x326   : > { %v1389_v12 = vpop.eup %1388  ;;  %v888_v13 = vmul.f32 1.442695, %v866_v11 }
 0x327   : > { %v908_v14 = vadd.f32 1.0, %v1389_v12 }
 0x328   : > { %1390 = vpow2.f32 %v888_v13 }
 0x329   : > { %1392 = vrcp.f32 %v908_v14  ;;  %v821_v15 = vpop.permute.xlu2 %820  ;;  %v935_v26 = vand.u32 2147483648, %v908_v14  ;;  %v933_v28 = vand.u32 2147483647, %v908_v14  ;;  %vm929_vm4 = vweird.f32 %v908_v14 }
 0x32a   : > { %v856_v16 = vadd.f32 %v821_v15, %v768_v56 }
 0x32b   : > { %v936_v34 = vor.u32 1.1754944e-38, %v935_v26  ;;  %vm934_vm6 = vcmp.eq.f32.partialorder %v933_v28, 8.507059e+37 }
 0x32c   : > { %v872_v17 = vsub.f32 0.0, %v856_v16 }
 0x32e   : > { %v1391_v18 = vpop.eup %1390  ;;  %v900_v19 = vmul.f32 1.442695, %v872_v17 }
 0x32f   : > { %v1393_v20 = vpop.eup %1392  ;;  %v914_v21 = vadd.f32 1.0, %v1391_v18 }
 0x330   : > { %v925_v22 = vmul.f32 %v1393_v20, %v908_v14  ;;  %1394 = vpow2.f32 %v900_v19  ;;  %vm930_vm3 = vweird.f32 %v1393_v20 }
 0x331   : > { %1396 = vrcp.f32 %v914_v21  ;;  %v803_v23 = vpop.permute.xlu2 %802  ;;  %vm931_vm5 = vmor %vm929_vm4, %vm930_vm3  ;;  %v1023_v44 = vand.u32 2147483647, %v914_v21  ;;  %v1025_v45 = vand.u32 2147483648, %v914_v21  ;;  %vm1019_vm8 = vweird.f32 %v914_v21 }
 0x332   : > { %v926_v24 = vsub.f32 1.0, %v925_v22  ;;  %v847_v25 = vadd.f32 %v803_v23, %v741_v61 }
 0x333   : > { %v1026_v54 = vor.u32 1.1754944e-38, %v1025_v45  ;;  %vm1024_vm10 = vcmp.eq.f32.partialorder %v1023_v44, 8.507059e+37 }
 0x334   : > { %v927_v27 = vmul.f32 %v1393_v20, %v926_v24  ;;  %v863_v29 = vsub.f32 0.0, %v847_v25 }
 0x336   : > { %v1395_v30 = vpop.eup %1394  ;;  %v928_v31 = vadd.f32 %v1393_v20, %v927_v27  ;;  %v882_v32 = vmul.f32 1.442695, %v863_v29 }
 0x337   : > { %v1397_v33 = vpop.eup %1396  ;;  %v1839_v35 = vadd.f32 1.0, %v1395_v30 }
 0x338   : > { %v932_v36 = vsel %vm931_vm5, %v1393_v20, %v928_v31  ;;  %v1015_v37 = vmul.f32 %v1397_v33, %v914_v21  ;;  %1398 = vpow2.f32 %v882_v32  ;;  %vm1020_vm7 = vweird.f32 %v1397_v33 }
 0x339   : > { %v937_v38 = vsel %vm934_vm6, %v936_v34, %v932_v36  ;;  %1400 = vrcp.f32 %v1839_v35  ;;  %v799_v39 = vpop.permute.xlu0 %798  ;;  %v815_v40 = vpop.permute.xlu2 %814  ;;  %vm1021_vm9 = vmor %vm1019_vm8, %vm1020_vm7  ;;  %v1115_v10 = vand.u32 2147483648, %v1839_v35  ;;  %v1113_v14 = vand.u32 2147483647, %v1839_v35 }
 0x33a   : > { %1164 = vst.msk [vmem:[%s1618_s22] sm:$0xff] %vm399_vm1, %v937_v38  ;;  %v1016_v41 = vsub.f32 1.0, %v1015_v37  ;;  %v845_v42 = vadd.f32 %v799_v39, %v1788_v55  ;;  %v853_v43 = vadd.f32 %v815_v40, %v1811_v63  ;;  %vm1109_vm12 = vweird.f32 %v1839_v35 }
 0x33b   : > { %v1116_v21 = vor.u32 1.1754944e-38, %v1115_v10  ;;  %vm1114_vm14 = vcmp.eq.f32.partialorder %v1113_v14, 8.507059e+37 }
 0x33c   : > { %v1017_v46 = vmul.f32 %v1397_v33, %v1016_v41  ;;  %v861_v47 = vsub.f32 0.0, %v845_v42  ;;  %v869_v48 = vsub.f32 0.0, %v853_v43 }
 0x33e   : > { %v1399_v49 = vpop.eup %1398  ;;  %v1018_v50 = vadd.f32 %v1397_v33, %v1017_v46  ;;  %v878_v51 = vmul.f32 1.442695, %v861_v47  ;;  %v894_v52 = vmul.f32 1.442695, %v869_v48 }
 0x33f   : > { %v1401_v53 = vpop.eup %1400  ;;  %v1846_v56 = vadd.f32 1.0, %v1399_v49 }
 0x340   : > { %v1022_v55 = vsel %vm1021_vm9, %v1397_v33, %v1018_v50  ;;  %v1105_v61 = vmul.f32 %v1401_v53, %v1839_v35  ;;  %1402 = vpow2.f32 %v878_v51  ;;  %vm1110_vm11 = vweird.f32 %v1401_v53 }
 0x341   : > { %v1027_v63 = vsel %vm1024_vm10, %v1026_v54, %v1022_v55  ;;  %1404 = vrcp.f32 %v1846_v56  ;;  %v811_v5 = vpop.permute.xlu0 %810  ;;  %v827_v6 = vpop.permute.xlu2 %826  ;;  %vm1111_vm13 = vmor %vm1109_vm12, %vm1110_vm11  ;;  %v980_v30 = vand.u32 2147483648, %v1846_v56  ;;  %v978_v33 = vand.u32 2147483647, %v1846_v56 }
 0x342   : > { %1170 = vst.msk [vmem:[%s1618_s22 + $0x30] sm:$0xff] %vm399_vm1, %v1027_v63  ;;  %v1106_v7 = vsub.f32 1.0, %v1105_v61  ;;  %1406 = vpow2.f32 %v894_v52  ;;  %v851_v8 = vadd.f32 %v811_v5, %v1793_v57  ;;  %v801_v9 = vpop.permute.xlu1 %800  ;;  %v859_v12 = vadd.f32 %v827_v6, %v1819_v1 }
 0x343   : > { %v846_v11 = vadd.f32 %v801_v9, %v1795_v58  ;;  %vm974_vm0 = vweird.f32 %v1846_v56  ;;  %v981_v38 = vor.u32 1.1754944e-38, %v980_v30  ;;  %vm979_vm3 = vcmp.eq.f32.partialorder %v978_v33, 8.507059e+37 }
 0x344   : > { %v1107_v13 = vmul.f32 %v1401_v53, %v1106_v7  ;;  %v867_v15 = vsub.f32 0.0, %v851_v8  ;;  %v875_v17 = vsub.f32 0.0, %v859_v12 }
 0x345   : > { %v862_v16 = vsub.f32 0.0, %v846_v11 }
 0x346   : > { %v1403_v18 = vpop.eup %1402  ;;  %v1108_v19 = vadd.f32 %v1401_v53, %v1107_v13  ;;  %v890_v57 = vmul.f32 1.442695, %v867_v15  ;;  %v906_v1 = vmul.f32 1.442695, %v875_v17 }
 0x347   : > { %v1405_v20 = vpop.eup %1404  ;;  %v1858_v22 = vadd.f32 1.0, %v1403_v18  ;;  %v880_v58 = vmul.f32 1.442695, %v862_v16 }
 0x348   : > { %v1407_v23 = vpop.eup %1406  ;;  %v1112_v24 = vsel %vm1111_vm13, %v1401_v53, %v1108_v19  ;;  %v970_v25 = vmul.f32 %v1405_v20, %v1846_v56  ;;  %1408 = vpow2.f32 %v890_v57  ;;  %vm975_vm15 = vweird.f32 %v1405_v20 }
 0x349   : > { %v1117_v26 = vsel %vm1114_vm14, %v1116_v21, %v1112_v24  ;;  %1410 = vrcp.f32 %v1858_v22  ;;  %v1864_v28 = vadd.f32 1.0, %v1407_v23  ;;  %vm976_vm2 = vmor %vm974_vm0, %vm975_vm15  ;;  %v948_v43 = vand.u32 2147483647, %v1858_v22 }
 0x34a   : > { %1176 = vst.msk [vmem:[%s1618_s22 + $0x60] sm:$0xff] %vm399_vm1, %v1117_v26  ;;  %v971_v27 = vsub.f32 1.0, %v970_v25  ;;  %1412 = vpow2.f32 %v880_v58  ;;  %v813_v29 = vpop.permute.xlu1 %812  ;;  %v950_v46 = vand.u32 2147483648, %v1858_v22  ;;  %vm944_vm4 = vweird.f32 %v1858_v22 }
 0x34b   : > { %1414 = vpow2.f32 %v906_v1  ;;  %v852_v31 = vadd.f32 %v813_v29, %v1804_v60  ;;  %v1068_v47 = vand.u32 2147483647, %v1864_v28  ;;  %v1070_v51 = vand.u32 2147483648, %v1864_v28 }
 0x34c   : > { %v972_v32 = vmul.f32 %v1405_v20, %v971_v27  ;;  %1416 = vrcp.f32 %v1864_v28  ;;  %vm1890_vm6 = vcmp.eq.f32.partialorder %v948_v43, 8.507059e+37  ;;  %v951_v5 = vor.u32 1.1754944e-38, %v950_v46 }
 0x34d   : > { %v868_v34 = vsub.f32 0.0, %v852_v31  ;;  %vm1064_vm7 = vweird.f32 %v1864_v28  ;;  %vm1896_vm8 = vcmp.eq.f32.partialorder %v1068_v47, 8.507059e+37  ;;  %v1071_v9 = vor.u32 1.1754944e-38, %v1070_v51 }
 0x34e   : > { %v1409_v35 = vpop.eup %1408  ;;  %v973_v36 = vadd.f32 %v1405_v20, %v972_v32 }
 0x34f   : > { %v1411_v37 = vpop.eup %1410  ;;  %v1871_v39 = vadd.f32 1.0, %v1409_v35  ;;  %v892_v40 = vmul.f32 1.442695, %v868_v34 }
 0x350   : > { %v1413_v41 = vpop.eup %1412  ;;  %v977_v60 = vsel %vm976_vm2, %v1405_v20, %v973_v36  ;;  %v940_v42 = vmul.f32 %v1411_v37, %v1858_v22  ;;  %vm945_vm5 = vweird.f32 %v1411_v37 }
 0x351   : > { %v1415_v44 = vpop.eup %1414  ;;  %v982_v45 = vsel %vm979_vm3, %v981_v38, %v977_v60  ;;  %1418 = vrcp.f32 %v1871_v39  ;;  %v805_v48 = vpop.permute.xlu0 %804  ;;  %v1881_v52 = vadd.f32 1.0, %v1413_v41  ;;  %v1038_v55 = vand.u32 2147483647, %v1871_v39  ;;  %vm946_vm9 = vmor %vm944_vm4, %vm945_vm5 }
 0x352   : > { %v1417_v49 = vpop.eup %1416  ;;  %1167 = vst.msk [vmem:[%s1618_s22 + $0x18] sm:$0xff] %vm399_vm1, %v982_v45  ;;  %v941_v50 = vsub.f32 1.0, %v940_v42  ;;  %v1883_v53 = vadd.f32 1.0, %v1415_v44  ;;  %1420 = vpow2.f32 %v892_v40  ;;  %v1040_v61 = vand.u32 2147483648, %v1871_v39 }
 0x353   : > { %v1060_v54 = vmul.f32 %v1417_v49, %v1864_v28  ;;  %1422 = vrcp.f32 %v1881_v52  ;;  %vm1065_vm10 = vweird.f32 %v1417_v49  ;;  %vm1034_vm11 = vweird.f32 %v1871_v39 }
 0x354   : > { %v942_v56 = vmul.f32 %v1411_v37, %v941_v50  ;;  %1424 = vrcp.f32 %v1883_v53  ;;  %v848_v12 = vadd.f32 %v805_v48, %v1813_v0  ;;  %vm1906_vm12 = vcmp.eq.f32.partialorder %v1038_v55, 8.507059e+37  ;;  %vm1066_vm14 = vmor %vm1064_vm7, %vm1065_vm10 }
 0x355   : > { %v1061_v6 = vsub.f32 1.0, %v1060_v54  ;;  %v1041_v16 = vor.u32 1.1754944e-38, %v1040_v61  ;;  %vm959_vm13 = vweird.f32 %v1881_v52  ;;  %v963_v22 = vand.u32 2147483647, %v1881_v52 }
 0x356   : > { %v943_v7 = vadd.f32 %v1411_v37, %v942_v56  ;;  %v864_v57 = vsub.f32 0.0, %v848_v12  ;;  %v965_v58 = vand.u32 2147483648, %v1881_v52  ;;  %vm1154_vm0 = vweird.f32 %v1883_v53 }
 0x357   : > { %v1419_v10 = vpop.eup %1418  ;;  %v1062_v11 = vmul.f32 %v1417_v49, %v1061_v6  ;;  %v1158_v33 = vand.u32 2147483647, %v1883_v53  ;;  %vm1936_vm4 = vcmp.eq.f32.partialorder %v963_v22, 8.507059e+37 }
 0x358   : > { %v947_v13 = vsel %vm946_vm9, %v1411_v37, %v943_v7  ;;  %v1030_v14 = vmul.f32 %v1419_v10, %v1871_v39  ;;  %v1421_v17 = vpop.eup %1420  ;;  %v884_v27 = vmul.f32 1.442695, %v864_v57  ;;  %vm1035_vm15 = vweird.f32 %v1419_v10 }
 0x359   : > { %v952_v18 = vsel %vm1890_vm6, %v951_v5, %v947_v13  ;;  %v1063_v19 = vadd.f32 %v1417_v49, %v1062_v11  ;;  %v817_v20 = vpop.permute.xlu0 %816  ;;  %v1423_v21 = vpop.eup %1422  ;;  %v1920_v1 = vadd.f32 1.0, %v1421_v17  ;;  %vm1036_vm2 = vmor %vm1034_vm11, %vm1035_vm15 }
 0x35a   : > { %1165 = vst.msk [vmem:[%s1618_s22 + $0x8] sm:$0xff] %vm399_vm1, %v952_v18  ;;  %v1031_v0 = vsub.f32 1.0, %v1030_v14  ;;  %v807_v23 = vpop.permute.xlu1 %806  ;;  %v1425_v24 = vpop.eup %1424  ;;  %v955_v26 = vmul.f32 %v1423_v21, %v1881_v52  ;;  %v854_v29 = vadd.f32 %v817_v20, %v1821_v2  ;;  %v1160_v2 = vand.u32 2147483648, %v1883_v53 }
 0x35b   : > { %v1067_v25 = vsel %vm1066_vm14, %v1417_v49, %v1063_v19  ;;  %v1150_v31 = vmul.f32 %v1425_v24, %v1883_v53  ;;  %1426 = vrcp.f32 %v1920_v1  ;;  %vm960_vm3 = vweird.f32 %v1423_v21 }
 0x35c   : > { %v1072_v28 = vsel %vm1896_vm8, %v1071_v9, %v1067_v25  ;;  %v1032_v30 = vmul.f32 %v1419_v10, %v1031_v0  ;;  %v956_v32 = vsub.f32 1.0, %v955_v26  ;;  %1428 = vpow2.f32 %v884_v27  ;;  %vm961_vm6 = vmor %vm959_vm13, %vm960_vm3 }
 0x35d   : > { %1173 = vst.msk [vmem:[%s1618_s22 + $0x48] sm:$0xff] %vm399_vm1, %v1072_v28  ;;  %v1151_v35 = vsub.f32 1.0, %v1150_v31  ;;  %v870_v37 = vsub.f32 0.0, %v854_v29  ;;  %v849_v38 = vadd.f32 %v807_v23, %v1823_v3  ;;  %vm1155_vm5 = vweird.f32 %v1425_v24 }
 0x35e   : > { %v1033_v34 = vadd.f32 %v1419_v10, %v1032_v30  ;;  %v957_v36 = vmul.f32 %v1423_v21, %v956_v32  ;;  %v966_v3 = vor.u32 1.1754944e-38, %v965_v58  ;;  %v1161_v47 = vor.u32 1.1754944e-38, %v1160_v2  ;;  %vm1156_vm7 = vmor %vm1154_vm0, %vm1155_vm5 }
 0x35f   : > { %v1152_v60 = vmul.f32 %v1425_v24, %v1151_v35  ;;  %v896_v44 = vmul.f32 1.442695, %v870_v37  ;;  %v865_v45 = vsub.f32 0.0, %v849_v38  ;;  %vm1159_vm8 = vcmp.eq.f32.partialorder %v1158_v33, 8.507059e+37 }
 0x360   : > { %v1037_v40 = vsel %vm1036_vm2, %v1419_v10, %v1033_v34  ;;  %v958_v43 = vadd.f32 %v1423_v21, %v957_v36  ;;  %v1055_v8 = vand.u32 2147483648, %v1920_v1  ;;  %vm1049_vm10 = vweird.f32 %v1920_v1 }
 0x361   : > { %v1042_v42 = vsel %vm1906_vm12, %v1041_v16, %v1037_v40  ;;  %v823_v39 = vpop.permute.xlu0 %822  ;;  %v1153_v46 = vadd.f32 %v1425_v24, %v1152_v60  ;;  %v1427_v50 = vpop.eup %1426  ;;  %1430 = vpow2.f32 %v896_v44  ;;  %v886_v54 = vmul.f32 1.442695, %v865_v45 }
 0x362   : > { %1171 = vst.msk [vmem:[%s1618_s22 + $0x38] sm:$0xff] %vm399_vm1, %v1042_v42  ;;  %v857_v48 = vadd.f32 %v823_v39, %v1802_v59  ;;  %v819_v49 = vpop.permute.xlu1 %818  ;;  %v962_v51 = vsel %vm961_vm6, %v1423_v21, %v958_v43  ;;  %v1429_v52 = vpop.eup %1428  ;;  %v1045_v59 = vmul.f32 %v1427_v50, %v1920_v1  ;;  %vm1050_vm9 = vweird.f32 %v1427_v50 }
 0x363   : > { %v855_v56 = vadd.f32 %v819_v49, %v1831_v4  ;;  %v967_v55 = vsel %vm1936_vm4, %v966_v3, %v962_v51  ;;  %v1157_v61 = vsel %vm1156_vm7, %v1425_v24, %v1153_v46  ;;  %v912_v5 = vadd.f32 1.0, %v1429_v52  ;;  %vm1051_vm11 = vmor %vm1049_vm10, %vm1050_vm9 }
 0x364   : > { %1166 = vst.msk [vmem:[%s1618_s22 + $0x10] sm:$0xff] %vm399_vm1, %v967_v55  ;;  %v1162_v63 = vsel %vm1159_vm8, %v1161_v47, %v1157_v61  ;;  %1432 = vpow2.f32 %v886_v54  ;;  %v873_v6 = vsub.f32 0.0, %v857_v48  ;;  %v1046_v53 = vsub.f32 1.0, %v1045_v59 }
 0x365   : > { %1179 = vst.msk [vmem:[%s1618_s22 + $0x78] sm:$0xff] %vm399_vm1, %v1162_v63  ;;  %v871_v7 = vsub.f32 0.0, %v855_v56  ;;  %v1053_v4 = vand.u32 2147483647, %v1920_v1  ;;  %1434 = vrcp.f32 %v912_v5  ;;  %v1056_v17 = vor.u32 1.1754944e-38, %v1055_v8 }
 0x366   : > { %v1047_v9 = vmul.f32 %v1427_v50, %v1046_v53  ;;  %v902_v10 = vmul.f32 1.442695, %v873_v6  ;;  %v993_v25 = vand.u32 2147483647, %v912_v5  ;;  %v995_v26 = vand.u32 2147483648, %v912_v5 }
 0x367   : > { %v898_v11 = vmul.f32 1.442695, %v871_v7  ;;  %v1431_v12 = vpop.eup %1430  ;;  %vm1054_vm12 = vcmp.eq.f32.partialorder %v1053_v4, 8.507059e+37  ;;  %vm989_vm14 = vweird.f32 %v912_v5 }
 0x368   : > { %v1048_v13 = vadd.f32 %v1427_v50, %v1047_v9  ;;  %v918_v14 = vadd.f32 1.0, %v1431_v12  ;;  %1436 = vpow2.f32 %v902_v10  ;;  %v996_v33 = vor.u32 1.1754944e-38, %v995_v26 }
 0x369   : > { %1438 = vpow2.f32 %v898_v11  ;;  %vm994_vm0 = vcmp.eq.f32.partialorder %v993_v25, 8.507059e+37 }
 0x36a   : > { %v825_v15 = vpop.permute.xlu1 %824  ;;  %v1433_v16 = vpop.eup %1432  ;;  %v1052_v19 = vsel %vm1051_vm11, %v1427_v50, %v1048_v13  ;;  %1440 = vrcp.f32 %v918_v14  ;;  %v1083_v35 = vand.u32 2147483647, %v918_v14  ;;  %v1085_v36 = vand.u32 2147483648, %v918_v14 }
 0x36b   : > { %v858_v18 = vadd.f32 %v825_v15, %v1809_v62  ;;  %v1435_v57 = vpop.eup %1434  ;;  %v1057_v20 = vsel %vm1054_vm12, %v1056_v17, %v1052_v19  ;;  %v913_v21 = vadd.f32 1.0, %v1433_v16  ;;  %vm1079_vm3 = vweird.f32 %v918_v14 }
 0x36c   : > { %1172 = vst.msk [vmem:[%s1618_s22 + $0x40] sm:$0xff] %vm399_vm1, %v1057_v20  ;;  %v985_v22 = vmul.f32 %v1435_v57, %v912_v5  ;;  %vm990_vm13 = vweird.f32 %v1435_v57  ;;  %vm1084_vm4 = vcmp.eq.f32.partialorder %v1083_v35, 8.507059e+37  ;;  %v1086_v46 = vor.u32 1.1754944e-38, %v1085_v36 }
 0x36d   : > { %v874_v0 = vsub.f32 0.0, %v858_v18  ;;  %1442 = vrcp.f32 %v913_v21  ;;  %vm991_vm15 = vmor %vm989_vm14, %vm990_vm13  ;;  %v1008_v42 = vand.u32 2147483647, %v913_v21  ;;  %v1010_v45 = vand.u32 2147483648, %v913_v21 }
 0x36e   : > { %v1437_v58 = vpop.eup %1436  ;;  %v986_v1 = vsub.f32 1.0, %v985_v22  ;;  %vm1004_vm7 = vweird.f32 %v913_v21 }
 0x36f   : > { %v904_v23 = vmul.f32 1.442695, %v874_v0  ;;  %v1439_v24 = vpop.eup %1438  ;;  %v1964_v27 = vadd.f32 1.0, %v1437_v58  ;;  %vm1009_vm8 = vcmp.eq.f32.partialorder %v1008_v42, 8.507059e+37  ;;  %v1011_v52 = vor.u32 1.1754944e-38, %v1010_v45 }
 0x370   : > { %v1441_v62 = vpop.eup %1440  ;;  %v987_v29 = vmul.f32 %v1435_v57, %v986_v1  ;;  %v1966_v28 = vadd.f32 1.0, %v1439_v24 }
 0x371   : > { %1444 = vpow2.f32 %v904_v23  ;;  %v1075_v30 = vmul.f32 %v1441_v62, %v918_v14  ;;  %vm1080_vm2 = vweird.f32 %v1441_v62  ;;  %v1128_v55 = vand.u32 2147483647, %v1964_v27 }
 0x372   : > { %1446 = vrcp.f32 %v1964_v27  ;;  %v988_v31 = vadd.f32 %v1435_v57, %v987_v29  ;;  %vm1081_vm5 = vmor %vm1079_vm3, %vm1080_vm2  ;;  %v1130_v61 = vand.u32 2147483648, %v1964_v27  ;;  %v1100_v6 = vand.u32 2147483648, %v1966_v28 }
 0x373   : > { %1448 = vrcp.f32 %v1966_v28  ;;  %v1443_v32 = vpop.eup %1442  ;;  %v1076_v34 = vsub.f32 1.0, %v1075_v30  ;;  %v1098_v4 = vand.u32 2147483647, %v1966_v28  ;;  %vm1124_vm12 = vweird.f32 %v1964_v27 }
 0x374   : > { %v992_v2 = vsel %vm991_vm15, %v1435_v57, %v988_v31  ;;  %v1000_v37 = vmul.f32 %v1443_v32, %v913_v21  ;;  %vm1005_vm6 = vweird.f32 %v1443_v32  ;;  %v1131_v10 = vor.u32 1.1754944e-38, %v1130_v61 }
 0x375   : > { %v997_v38 = vsel %vm994_vm0, %v996_v33, %v992_v2  ;;  %v1077_v40 = vmul.f32 %v1441_v62, %v1076_v34  ;;  %vm1006_vm9 = vmor %vm1004_vm7, %vm1005_vm6  ;;  %vm1094_vm14 = vweird.f32 %v1966_v28  ;;  %vm1129_vm15 = vcmp.eq.f32.partialorder %v1128_v55, 8.507059e+37 }
 0x376   : > { %1168 = vst.msk [vmem:[%s1618_s22 + $0x20] sm:$0xff] %vm399_vm1, %v997_v38  ;;  %v1001_v60 = vsub.f32 1.0, %v1000_v37  ;;  %v1101_v13 = vor.u32 1.1754944e-38, %v1100_v6  ;;  %vm1099_vm2 = vcmp.eq.f32.partialorder %v1098_v4, 8.507059e+37 }
 0x377   : > { %v1445_v41 = vpop.eup %1444  ;;  %v1078_v44 = vadd.f32 %v1441_v62, %v1077_v40 }
 0x378   : > { %v1447_v43 = vpop.eup %1446  ;;  %v922_v39 = vadd.f32 1.0, %v1445_v41  ;;  %v1002_v47 = vmul.f32 %v1443_v32, %v1001_v60 }
 0x379   : > { %v1449_v3 = vpop.eup %1448  ;;  %v1120_v48 = vmul.f32 %v1447_v43, %v1964_v27  ;;  %v1082_v49 = vsel %vm1081_vm5, %v1441_v62, %v1078_v44  ;;  %vm1125_vm10 = vweird.f32 %v1447_v43 }
 0x37a   : > { %v1090_v50 = vmul.f32 %v1449_v3, %v1966_v28  ;;  %1450 = vrcp.f32 %v922_v39  ;;  %v1087_v51 = vsel %vm1084_vm4, %v1086_v46, %v1082_v49  ;;  %v1003_v54 = vadd.f32 %v1443_v32, %v1002_v47  ;;  %vm1126_vm13 = vmor %vm1124_vm12, %vm1125_vm10 }
 0x37b   : > { %v1121_v56 = vsub.f32 1.0, %v1120_v48  ;;  %1174 = vst.msk [vmem:[%s1618_s22 + $0x50] sm:$0xff] %vm399_vm1, %v1087_v51  ;;  %vm1095_vm11 = vweird.f32 %v1449_v3  ;;  %v1145_v19 = vand.u32 2147483648, %v922_v39  ;;  %v1143_v20 = vand.u32 2147483647, %v922_v39 }
 0x37c   : > { %v1091_v59 = vsub.f32 1.0, %v1090_v50  ;;  %v1007_v63 = vsel %vm1006_vm9, %v1443_v32, %v1003_v54  ;;  %vm1096_vm0 = vmor %vm1094_vm14, %vm1095_vm11  ;;  %vm1139_vm4 = vweird.f32 %v922_v39 }
 0x37d   : > { %v1122_v5 = vmul.f32 %v1447_v43, %v1121_v56  ;;  %v1012_v53 = vsel %vm1009_vm8, %v1011_v52, %v1007_v63  ;;  %v1146_v0 = vor.u32 1.1754944e-38, %v1145_v19  ;;  %vm1144_vm6 = vcmp.eq.f32.partialorder %v1143_v20, 8.507059e+37 }
 0x37e   : > { %v1092_v7 = vmul.f32 %v1449_v3, %v1091_v59  ;;  %1169 = vst.msk [vmem:[%s1618_s22 + $0x28] sm:$0xff] %vm399_vm1, %v1012_v53 }
 0x37f   : > { %v1123_v8 = vadd.f32 %v1447_v43, %v1122_v5 }
 0x380   : > { %v1451_v9 = vpop.eup %1450  ;;  %v1093_v11 = vadd.f32 %v1449_v3, %v1092_v7 }
 0x381   : > { %v1127_v12 = vsel %vm1126_vm13, %v1447_v43, %v1123_v8  ;;  %v1135_v14 = vmul.f32 %v1451_v9, %v922_v39  ;;  %vm1140_vm3 = vweird.f32 %v1451_v9 }
 0x382   : > { %v1132_v15 = vsel %vm1129_vm15, %v1131_v10, %v1127_v12  ;;  %v1097_v16 = vsel %vm1096_vm0, %v1449_v3, %v1093_v11  ;;  %vm1141_vm5 = vmor %vm1139_vm4, %vm1140_vm3 }
 0x383   : > { %1177 = vst.msk [vmem:[%s1618_s22 + $0x68] sm:$0xff] %vm399_vm1, %v1132_v15  ;;  %v1102_v17 = vsel %vm1099_vm2, %v1101_v13, %v1097_v16  ;;  %v1136_v18 = vsub.f32 1.0, %v1135_v14 }
 0x384   : > { %1175 = vst.msk [vmem:[%s1618_s22 + $0x58] sm:$0xff] %vm399_vm1, %v1102_v17 }
 0x385   : > { %v1137_v57 = vmul.f32 %v1451_v9, %v1136_v18 }
 0x387   : > { %v1138_v21 = vadd.f32 %v1451_v9, %v1137_v57 }
 0x389   : > { %v1142_v22 = vsel %vm1141_vm5, %v1451_v9, %v1138_v21 }
 0x38a   : > { %v1147_v58 = vsel %vm1144_vm6, %v1146_v0, %v1142_v22 }
 0x38b   : > { %1178 = vst.msk [vmem:[%s1618_s22 + $0x70] sm:$0xff] %vm399_vm1, %v1147_v58 }
 0x38c PF: > { %s13_s18 = sadd.s32 1, %s1506_s18   ;;  %s2023_s12 = smov %s1486_s13 }
 0x38d   : > { %p10_p13 = scmp.ge.s32.totalorder %s13_s18, 6   ;;  %s2024_s13 = smov %s1583_s25 }
 0x38e   : > { %s2025_s14 = smov %s1498_s16  ;;  %s2026_s15 = smov %s1502_s17 }
 0x38f   : > { %s2027_s16 = smov %s2030_s19  ;;  %s2028_s17 = smov %s2034_s20 }
 0x390   :  { %12 = sbr.rel (!%p10_p13) target bundleno = 4 (0x4), region = 113 }

</bundles_post_ra>
